<compile_context>
chip_gen: v7x
topology: tpu7x:2x2x1
jax: 0.10.0
libtpu: 0.0.40
codegen_flags: <defaults>
</compile_context>

<pallas_src>
import functools

import jax
import jax.numpy as jnp
from jax.experimental import pallas as pl
from jax.experimental.pallas import tpu as pltpu

LN_EPS = 1e-5                     # torch.nn.LayerNorm default
_INV_SQRT2 = 0.7071067811865476
_MIB = 1 << 20


def _round_up(x, m):
    return (x + m - 1) // m * m


def _vmem_capacity_bytes():
    try:
        cap = int(getattr(pltpu.get_tpu_info(), "vmem_capacity_bytes", 0))
        if cap > 0:
            return cap
    except Exception:
        pass
    return 64 * _MIB              # conservative (v7x per-TensorCore)


def _tpu_generation():
    try:
        kind = jax.devices()[0].device_kind.lower()
    except Exception:
        return 6
    if "v7" in kind or "7x" in kind:
        return 7
    if "v6" in kind:
        return 6
    if "v5" in kind:
        return 5
    if "v4" in kind:
        return 4
    return 6


def _default_tiles(gen):
    # (row_tile, hidden_tile):
    #  v5e: 4x128^2 MXU saturates at 256; small scoped VMEM -> 256/256.
    #  v6e: ~655 FLOP/byte needed to be MXU-bound on re-streamed weights -> tm >= 1024
    #       (only matters on the tiled path; the resident path removes re-streaming).
    #  v7x: 64 MiB physical VMEM, ~311 FLOP/byte threshold -> 512/512 is plenty.
    if gen >= 7:
        return 512, 512
    if gen == 6:
        return 1024, 512
    return 256, 256


def _choose_row_tile(M, preferred):
    """Largest row tile <= preferred keeping padded-row waste <= ~12.5%."""
    m8 = _round_up(M, 8)
    if m8 <= preferred:
        return m8
    tile = preferred
    while tile > 128:
        pad = _round_up(m8, tile) - m8
        if pad * 8 <= m8:
            return tile
        tile = max(128, (tile // 2) // 8 * 8)
    return 128


def _resident_vmem_bytes(tm, dim, hidden, x_bytes, out_bytes, w_bytes=2):
    weights = 2 * 2 * dim * hidden * w_bytes                 # W1 + W2, 2 buffers each
    acts = 2 * tm * dim * (x_bytes + out_bytes)              # double-buffered x / out blocks
    params = 2 * (3 * dim + hidden) * 4                      # gamma, beta, b1, b2
    temps = tm * hidden * (4 + w_bytes) + 2 * tm * dim * 4   # h f32 + h bf16 + LN temporaries
    return weights + acts + params + temps


def _tiled_vmem_bytes(tm, th, dim, x_bytes, out_bytes, w_bytes=2):
    wchunks = 2 * 2 * dim * th * w_bytes                     # W1/W2 chunks, 2 buffers each
    acts = 2 * tm * dim * (x_bytes + out_bytes)
    scratch = tm * dim * (2 + 4)                             # bf16 xn + f32 acc
    params = 2 * (3 * dim + th) * 4
    temps = tm * th * (4 + w_bytes) + 2 * tm * dim * 4
    return wchunks + acts + scratch + params + temps


def _select_config(M, dim, hidden, x_bytes, out_bytes, row_tile, hidden_tile, force_path):
    gen = _tpu_generation()
    def_tm, def_th = _default_tiles(gen)
    pref_tm = def_tm if row_tile is None else row_tile
    pref_th = def_th if hidden_tile is None else hidden_tile
    budget = int(_vmem_capacity_bytes() * 0.8)

    tm = _choose_row_tile(M, pref_tm)

    if force_path != "tiled":
        t = tm
        while True:
            need = _resident_vmem_bytes(t, dim, hidden, x_bytes, out_bytes)
            if need <= budget or force_path == "resident":
                return "resident", t, None, need
            if t <= 128:
                break
            t = max(128, (t // 2) // 8 * 8)

    th = max(128, min(pref_th, _round_up(hidden, 128)) // 128 * 128)
    while True:
        need = _tiled_vmem_bytes(tm, th, dim, x_bytes, out_bytes)
        if need <= budget or (tm <= 128 and th <= 128):
            return "tiled", tm, th, need
        if th > 256:
            th = max(128, (th // 2) // 128 * 128)
        elif tm > 128:
            tm = max(128, (tm // 2) // 8 * 8)
        else:
            th = max(128, (th // 2) // 128 * 128)


def _gelu(h, approximate):
    if approximate:
        # tanh-approx routes the transcendental to the otherwise-idle EUP slot.
        return jax.nn.gelu(h, approximate=True)
    # Exact erf form -- matches torch.nn.GELU() default.
    return 0.5 * h * (1.0 + jax.lax.erf(h * jnp.float32(_INV_SQRT2)))


def _ffn_resident_kernel(x_ref, g_ref, b_ref, w1_ref, b1_ref, w2_ref, b2_ref, o_ref,
                         *, approx_gelu):
    """Grid = (row_tiles [parallel],); W1/W2 stay resident in VMEM (constant index_map)."""
    x = x_ref[...].astype(jnp.float32)
    mean = jnp.mean(x, axis=-1, keepdims=True)
    var = jnp.mean((x - mean) ** 2, axis=-1, keepdims=True)
    xn = (x - mean) * jax.lax.rsqrt(var + LN_EPS) * g_ref[...] + b_ref[...]

    h = jnp.dot(xn.astype(w1_ref.dtype), w1_ref[...],
                preferred_element_type=jnp.float32) + b1_ref[...]
    h = _gelu(h, approx_gelu)
    # Dropout(p=0.0) in forward/eval is identity.
    # TODO(synk): stochastic dropout for p>0 (training) via pltpu.prng_seed/prng_random_bits.
    y = jnp.dot(h.astype(w2_ref.dtype), w2_ref[...],
                preferred_element_type=jnp.float32) + b2_ref[...]
    o_ref[...] = y.astype(o_ref.dtype)


def _ffn_tiled_kernel(x_ref, g_ref, b_ref, w1_ref, b1_ref, w2_ref, b2_ref, o_ref,
                      xn_ref, acc_ref, *, approx_gelu):
    """Grid = (row_tiles [parallel], hidden_tiles [arbitrary reduction])."""
    hk = pl.program_id(1)

    @pl.when(hk == 0)
    def _init():
        x = x_ref[...].astype(jnp.float32)
        mean = jnp.mean(x, axis=-1, keepdims=True)
        var = jnp.mean((x - mean) ** 2, axis=-1, keepdims=True)
        xn = (x - mean) * jax.lax.rsqrt(var + LN_EPS) * g_ref[...] + b_ref[...]
        xn_ref[...] = xn.astype(xn_ref.dtype)         # bf16 for the MXU
        acc_ref[...] = jnp.zeros_like(acc_ref)

    h = jnp.dot(xn_ref[...], w1_ref[...],
                preferred_element_type=jnp.float32) + b1_ref[...]
    h = _gelu(h, approx_gelu)
    acc_ref[...] += jnp.dot(h.astype(w2_ref.dtype), w2_ref[...],
                            preferred_element_type=jnp.float32)

    @pl.when(hk == pl.num_programs(1) - 1)
    def _finalize():
        o_ref[...] = (acc_ref[...] + b2_ref[...]).astype(o_ref.dtype)


def feed_forward(x, gamma, beta, w1, b1, w2, b2, *,
                 row_tile=None, hidden_tile=None, mxu_dtype=jnp.bfloat16,
                 out_dtype=None, approx_gelu=False, force_path=None):
    """x: (B, N, dim). w1: (dim, hidden), w2: (hidden, dim) (transposed vs. torch Linear)."""
    B, N, dim = x.shape
    hidden = w1.shape[1]
    M = B * N
    out_dtype = x.dtype if out_dtype is None else out_dtype

    x_bytes = jnp.dtype(mxu_dtype).itemsize
    out_bytes = jnp.dtype(out_dtype).itemsize
    path, tm, th, vmem_need = _select_config(
        M, dim, hidden, x_bytes, out_bytes, row_tile, hidden_tile, force_path)

    m_pad = _round_up(_round_up(M, 8), tm)
    x2d = x.reshape(M, dim).astype(mxu_dtype)       # bf16 activations; LN stats stay f32 in-kernel
    if m_pad != M:
        x2d = jnp.pad(x2d, ((0, m_pad - M), (0, 0)))

    w1_c = w1.astype(mxu_dtype)
    w2_c = w2.astype(mxu_dtype)
    g2 = gamma.astype(jnp.float32).reshape(1, dim)
    be2 = beta.astype(jnp.float32).reshape(1, dim)
    b1_2 = b1.astype(jnp.float32).reshape(1, hidden)
    b2_2 = b2.astype(jnp.float32).reshape(1, dim)

    cap = _vmem_capacity_bytes()
    vmem_limit = int(min(cap * 9 // 10, max(32 * _MIB, vmem_need * 3 // 2)))
    cost = pl.CostEstimate(
        flops=4 * M * dim * hidden + 10 * M * dim,
        transcendentals=M * hidden + M,
        bytes_accessed=M * dim * (x_bytes + out_bytes)
        + 2 * dim * hidden * jnp.dtype(mxu_dtype).itemsize
        + (3 * dim + hidden) * 4)

    if path == "resident":
        kernel = functools.partial(_ffn_resident_kernel, approx_gelu=approx_gelu)
        out2d = pl.pallas_call(
            kernel,
            out_shape=jax.ShapeDtypeStruct((m_pad, dim), out_dtype),
            grid_spec=pltpu.PrefetchScalarGridSpec(
                num_scalar_prefetch=0,
                grid=(m_pad // tm,),
                in_specs=[
                    pl.BlockSpec((tm, dim), lambda i: (i, 0)),        # x rows
                    pl.BlockSpec((1, dim), lambda i: (0, 0)),         # gamma
                    pl.BlockSpec((1, dim), lambda i: (0, 0)),         # beta
                    pl.BlockSpec((dim, hidden), lambda i: (0, 0)),    # W1 (resident)
                    pl.BlockSpec((1, hidden), lambda i: (0, 0)),      # b1
                    pl.BlockSpec((hidden, dim), lambda i: (0, 0)),    # W2 (resident)
                    pl.BlockSpec((1, dim), lambda i: (0, 0)),         # b2
                ],
                out_specs=pl.BlockSpec((tm, dim), lambda i: (i, 0)),
            ),
            compiler_params=pltpu.CompilerParams(
                dimension_semantics=("parallel",),
                vmem_limit_bytes=vmem_limit),
            cost_estimate=cost,
        )(x2d, g2, be2, w1_c, b1_2, w2_c, b2_2)
    else:
        # Pad hidden to a multiple of the hidden tile: zero W1 columns / W2 rows / b1
        # entries contribute nothing to the accumulator.
        h_pad = _round_up(hidden, th)
        if h_pad != hidden:
            w1_c = jnp.pad(w1_c, ((0, 0), (0, h_pad - hidden)))
            w2_c = jnp.pad(w2_c, ((0, h_pad - hidden), (0, 0)))
            b1_2 = jnp.pad(b1_2, ((0, 0), (0, h_pad - hidden)))
        kernel = functools.partial(_ffn_tiled_kernel, approx_gelu=approx_gelu)
        out2d = pl.pallas_call(
            kernel,
            out_shape=jax.ShapeDtypeStruct((m_pad, dim), out_dtype),
            grid_spec=pltpu.PrefetchScalarGridSpec(
                num_scalar_prefetch=0,
                grid=(m_pad // tm, h_pad // th),
                in_specs=[
                    pl.BlockSpec((tm, dim), lambda i, k: (i, 0)),     # x rows
                    pl.BlockSpec((1, dim), lambda i, k: (0, 0)),      # gamma
                    pl.BlockSpec((1, dim), lambda i, k: (0, 0)),      # beta
                    pl.BlockSpec((dim, th), lambda i, k: (0, k)),     # W1 chunk (in, out)
                    pl.BlockSpec((1, th), lambda i, k: (0, k)),       # b1 chunk
                    pl.BlockSpec((th, dim), lambda i, k: (k, 0)),     # W2 chunk (in, out)
                    pl.BlockSpec((1, dim), lambda i, k: (0, 0)),      # b2
                ],
                out_specs=pl.BlockSpec((tm, dim), lambda i, k: (i, 0)),
                scratch_shapes=[
                    pltpu.VMEM((tm, dim), mxu_dtype),    # LayerNorm'ed rows (written once)
                    pltpu.VMEM((tm, dim), jnp.float32),  # f32 accumulator over hidden chunks
                ],
            ),
            compiler_params=pltpu.CompilerParams(
                dimension_semantics=("parallel", "arbitrary"),
                vmem_limit_bytes=vmem_limit),
            cost_estimate=cost,
        )(x2d, g2, be2, w1_c, b1_2, w2_c, b2_2)

    return out2d[:M].reshape(B, N, dim)


def _reference_f32(x, gamma, beta, w1, b1, w2, b2):
    """Pure f32 reference (PyTorch semantics)."""
    xf = x.astype(jnp.float32)
    mean = jnp.mean(xf, axis=-1, keepdims=True)
    var = jnp.mean((xf - mean) ** 2, axis=-1, keepdims=True)
    xn = (xf - mean) * jax.lax.rsqrt(var + LN_EPS) * gamma + beta
    h = xn @ w1 + b1
    h = 0.5 * h * (1.0 + jax.lax.erf(h * _INV_SQRT2))
    return (h @ w2 + b2).astype(x.dtype)


def _reference_mxu(x, gamma, beta, w1, b1, w2, b2, mxu_dtype=jnp.bfloat16):
    """Reference mirroring the kernel's precision (bf16 activations/MXU, f32 statistics/accumulate)."""
    xf = x.astype(mxu_dtype).astype(jnp.float32)
    mean = jnp.mean(xf, axis=-1, keepdims=True)
    var = jnp.mean((xf - mean) ** 2, axis=-1, keepdims=True)
    xn = (xf - mean) * jax.lax.rsqrt(var + LN_EPS) * gamma + beta
    h = jnp.dot(xn.astype(mxu_dtype), w1.astype(mxu_dtype),
                preferred_element_type=jnp.float32) + b1
    h = 0.5 * h * (1.0 + jax.lax.erf(h * _INV_SQRT2))
    y = jnp.dot(h.astype(mxu_dtype), w2.astype(mxu_dtype),
                preferred_element_type=jnp.float32) + b2
    return y.astype(x.dtype)


if __name__ == "__main__":
    # Small but lane-dense ViT-ish shapes: batch=2, seq=8 tokens, dim=128, hidden_dim=256.
    B, N, DIM, HID = 2, 8, 128, 256
    key = jax.random.PRNGKey(0)
    kx, k1, k2, k3, k4 = jax.random.split(key, 5)

    x = jax.random.normal(kx, (B, N, DIM), dtype=jnp.float32)
    gamma = jnp.ones((DIM,), jnp.float32)
    beta = jnp.zeros((DIM,), jnp.float32)
    w1 = jax.random.normal(k1, (DIM, HID), jnp.float32) * (1.0 / jnp.sqrt(DIM))
    b1 = jax.random.normal(k2, (HID,), jnp.float32) * 0.01
    w2 = jax.random.normal(k3, (HID, DIM), jnp.float32) * (1.0 / jnp.sqrt(HID))
    b2 = jax.random.normal(k4, (DIM,), jnp.float32) * 0.01

    ref_mxu = _reference_mxu(x, gamma, beta, w1, b1, w2, b2)
    ref_f32 = _reference_f32(x, gamma, beta, w1, b1, w2, b2)

    # Resident-weight fast path (default for these shapes).
    out = jax.block_until_ready(feed_forward(x, gamma, beta, w1, b1, w2, b2))
    assert out.shape == (B, N, DIM)
    assert jnp.allclose(out, ref_mxu, atol=2e-3, rtol=2e-3), "resident: mismatch vs bf16-MXU reference"
    assert jnp.allclose(out, ref_f32, atol=5e-2, rtol=5e-2), "resident: mismatch vs f32 reference"

    # Hidden-tiled reduction path (used automatically when dim*hidden exceeds the VMEM budget).
    out_t = jax.block_until_ready(
        feed_forward(x, gamma, beta, w1, b1, w2, b2, hidden_tile=128, force_path="tiled"))
    assert jnp.allclose(out_t, ref_mxu, atol=2e-3, rtol=2e-3), "tiled: mismatch vs bf16-MXU reference"
    assert jnp.allclose(out_t, ref_f32, atol=5e-2, rtol=5e-2), "tiled: mismatch vs f32 reference"

    print("KERNEL_OK")
</pallas_src>

<mosaic_0001>
module attributes {stable_mosaic.version = 11 : i64} {
  func.func @_ffn_resident_kernel(%arg0: i32, %arg1: memref<16x128xbf16, #tpu.memory_space<vmem>>, %arg2: memref<1x128xf32, #tpu.memory_space<vmem>>, %arg3: memref<1x128xf32, #tpu.memory_space<vmem>>, %arg4: memref<128x256xbf16, #tpu.memory_space<vmem>>, %arg5: memref<1x256xf32, #tpu.memory_space<vmem>>, %arg6: memref<256x128xbf16, #tpu.memory_space<vmem>>, %arg7: memref<1x128xf32, #tpu.memory_space<vmem>>, %arg8: memref<16x128xf32, #tpu.memory_space<vmem>>) attributes {dimension_semantics = [#tpu.dimension_semantics<parallel>], iteration_bounds = array<i64: 1>, scalar_prefetch = 0 : i64, scratch_operands = 0 : i64, tpu.core_type = #tpu.core_type<tc>, window_params = [{transform_indices = @transform_0, window_bounds = array<i64: 16, 128>}, {pipeline_mode = #tpu.pipeline_mode<synchronous>, transform_indices = @transform_1, window_bounds = array<i64: 1, 128>}, {pipeline_mode = #tpu.pipeline_mode<synchronous>, transform_indices = @transform_2, window_bounds = array<i64: 1, 128>}, {pipeline_mode = #tpu.pipeline_mode<synchronous>, transform_indices = @transform_3, window_bounds = array<i64: 128, 256>}, {pipeline_mode = #tpu.pipeline_mode<synchronous>, transform_indices = @transform_4, window_bounds = array<i64: 1, 256>}, {pipeline_mode = #tpu.pipeline_mode<synchronous>, transform_indices = @transform_5, window_bounds = array<i64: 256, 128>}, {pipeline_mode = #tpu.pipeline_mode<synchronous>, transform_indices = @transform_6, window_bounds = array<i64: 1, 128>}, {transform_indices = @transform_7, window_bounds = array<i64: 16, 128>}]} {
    %c0 = arith.constant 0 : index
    %c0_0 = arith.constant 0 : index
    %0 = vector.load %arg1[%c0, %c0_0] : memref<16x128xbf16, #tpu.memory_space<vmem>>, vector<16x128xbf16>
    %1 = arith.extf %0 : vector<16x128xbf16> to vector<16x128xf32>
    %cst = arith.constant dense<0.000000e+00> : vector<16xf32>
    %2 = vector.multi_reduction <add>, %1, %cst [1] : vector<16x128xf32> to vector<16xf32>
    %3 = vector.shape_cast %2 : vector<16xf32> to vector<16x1xf32>
    %cst_1 = arith.constant 1.280000e+02 : f32
    %4 = vector.broadcast %cst_1 : f32 to vector<16x1xf32>
    %5 = arith.divf %3, %4 : vector<16x1xf32>
    %6 = vector.broadcast %5 : vector<16x1xf32> to vector<16x128xf32>
    %7 = arith.subf %1, %6 : vector<16x128xf32>
    %8 = arith.mulf %7, %7 : vector<16x128xf32>
    %cst_2 = arith.constant dense<0.000000e+00> : vector<16xf32>
    %9 = vector.multi_reduction <add>, %8, %cst_2 [1] : vector<16x128xf32> to vector<16xf32>
    %10 = vector.shape_cast %9 : vector<16xf32> to vector<16x1xf32>
    %cst_3 = arith.constant 1.280000e+02 : f32
    %11 = vector.broadcast %cst_3 : f32 to vector<16x1xf32>
    %12 = arith.divf %10, %11 : vector<16x1xf32>
    %13 = vector.broadcast %5 : vector<16x1xf32> to vector<16x128xf32>
    %14 = arith.subf %1, %13 : vector<16x128xf32>
    %cst_4 = arith.constant 9.99999974E-6 : f32
    %15 = vector.broadcast %cst_4 : f32 to vector<16x1xf32>
    %16 = arith.addf %12, %15 : vector<16x1xf32>
    %17 = math.rsqrt %16 : vector<16x1xf32>
    %18 = vector.broadcast %17 : vector<16x1xf32> to vector<16x128xf32>
    %19 = arith.mulf %14, %18 : vector<16x128xf32>
    %c0_5 = arith.constant 0 : index
    %c0_6 = arith.constant 0 : index
    %20 = vector.load %arg2[%c0_5, %c0_6] : memref<1x128xf32, #tpu.memory_space<vmem>>, vector<1x128xf32>
    %21 = vector.broadcast %20 : vector<1x128xf32> to vector<16x128xf32>
    %22 = arith.mulf %19, %21 : vector<16x128xf32>
    %c0_7 = arith.constant 0 : index
    %c0_8 = arith.constant 0 : index
    %23 = vector.load %arg3[%c0_7, %c0_8] : memref<1x128xf32, #tpu.memory_space<vmem>>, vector<1x128xf32>
    %24 = vector.broadcast %23 : vector<1x128xf32> to vector<16x128xf32>
    %25 = arith.addf %22, %24 : vector<16x128xf32>
    %26 = arith.truncf %25 : vector<16x128xf32> to vector<16x128xbf16>
    %c0_9 = arith.constant 0 : index
    %c0_10 = arith.constant 0 : index
    %27 = vector.load %arg4[%c0_9, %c0_10] : memref<128x256xbf16, #tpu.memory_space<vmem>>, vector<128x256xbf16>
    %cst_11 = arith.constant dense<0.000000e+00> : vector<16x256xf32>
    %28 = tpu.matmul %26, %27, %cst_11 {dimension_numbers = #tpu.dot_dimension_numbers<[1], [0], [0], [1], [0, 0, 1, 1], [], []>} : vector<16x128xbf16>, vector<128x256xbf16>, vector<16x256xf32> -> vector<16x256xf32>
    %c0_12 = arith.constant 0 : index
    %c0_13 = arith.constant 0 : index
    %29 = vector.load %arg5[%c0_12, %c0_13] : memref<1x256xf32, #tpu.memory_space<vmem>>, vector<1x256xf32>
    %30 = vector.broadcast %29 : vector<1x256xf32> to vector<16x256xf32>
    %31 = arith.addf %28, %30 : vector<16x256xf32>
    %cst_14 = arith.constant 5.000000e-01 : f32
    %32 = vector.broadcast %cst_14 : f32 to vector<16x256xf32>
    %33 = arith.mulf %32, %31 : vector<16x256xf32>
    %cst_15 = arith.constant 0.707106769 : f32
    %34 = vector.broadcast %cst_15 : f32 to vector<16x256xf32>
    %35 = arith.mulf %31, %34 : vector<16x256xf32>
    %36 = math.erf %35 : vector<16x256xf32>
    %cst_16 = arith.constant 1.000000e+00 : f32
    %37 = vector.broadcast %cst_16 : f32 to vector<16x256xf32>
    %38 = arith.addf %37, %36 : vector<16x256xf32>
    %39 = arith.mulf %33, %38 : vector<16x256xf32>
    %40 = arith.truncf %39 : vector<16x256xf32> to vector<16x256xbf16>
    %c0_17 = arith.constant 0 : index
    %c0_18 = arith.constant 0 : index
    %41 = vector.load %arg6[%c0_17, %c0_18] : memref<256x128xbf16, #tpu.memory_space<vmem>>, vector<256x128xbf16>
    %cst_19 = arith.constant dense<0.000000e+00> : vector<16x128xf32>
    %42 = tpu.matmul %40, %41, %cst_19 {dimension_numbers = #tpu.dot_dimension_numbers<[1], [0], [0], [1], [0, 0, 1, 1], [], []>} : vector<16x256xbf16>, vector<256x128xbf16>, vector<16x128xf32> -> vector<16x128xf32>
    %c0_20 = arith.constant 0 : index
    %c0_21 = arith.constant 0 : index
    %43 = vector.load %arg7[%c0_20, %c0_21] : memref<1x128xf32, #tpu.memory_space<vmem>>, vector<1x128xf32>
    %44 = vector.broadcast %43 : vector<1x128xf32> to vector<16x128xf32>
    %45 = arith.addf %42, %44 : vector<16x128xf32>
    %c0_22 = arith.constant 0 : index
    %c0_23 = arith.constant 0 : index
    %46 = vector.load %arg8[%c0_22, %c0_23] : memref<16x128xf32, #tpu.memory_space<vmem>>, vector<16x128xf32>
    tpu.vector_store %arg8[%c0_22, %c0_23], %45 {strides = array<i32>} : memref<16x128xf32, #tpu.memory_space<vmem>>, vector<16x128xf32>,
    return
  }
  func.func @transform_0(%arg0: i32) -> (i32, i32) {
    %c0_i32 = arith.constant 0 : i32
    %c0_i32_0 = arith.constant 0 : i32
    return %arg0, %c0_i32 : i32, i32
  }
  func.func @transform_1(%arg0: i32) -> (i32, i32) {
    %c0_i32 = arith.constant 0 : i32
    %c0_i32_0 = arith.constant 0 : i32
    %c0_i32_1 = arith.constant 0 : i32
    return %c0_i32, %c0_i32_0 : i32, i32
  }
  func.func @transform_2(%arg0: i32) -> (i32, i32) {
    %c0_i32 = arith.constant 0 : i32
    %c0_i32_0 = arith.constant 0 : i32
    %c0_i32_1 = arith.constant 0 : i32
    return %c0_i32, %c0_i32_0 : i32, i32
  }
  func.func @transform_3(%arg0: i32) -> (i32, i32) {
    %c0_i32 = arith.constant 0 : i32
    %c0_i32_0 = arith.constant 0 : i32
    %c0_i32_1 = arith.constant 0 : i32
    return %c0_i32, %c0_i32_0 : i32, i32
  }
  func.func @transform_4(%arg0: i32) -> (i32, i32) {
    %c0_i32 = arith.constant 0 : i32
    %c0_i32_0 = arith.constant 0 : i32
    %c0_i32_1 = arith.constant 0 : i32
    return %c0_i32, %c0_i32_0 : i32, i32
  }
  func.func @transform_5(%arg0: i32) -> (i32, i32) {
    %c0_i32 = arith.constant 0 : i32
    %c0_i32_0 = arith.constant 0 : i32
    %c0_i32_1 = arith.constant 0 : i32
    return %c0_i32, %c0_i32_0 : i32, i32
  }
  func.func @transform_6(%arg0: i32) -> (i32, i32) {
    %c0_i32 = arith.constant 0 : i32
    %c0_i32_0 = arith.constant 0 : i32
    %c0_i32_1 = arith.constant 0 : i32
    return %c0_i32, %c0_i32_0 : i32, i32
  }
  func.func @transform_7(%arg0: i32) -> (i32, i32) {
    %c0_i32 = arith.constant 0 : i32
    %c0_i32_0 = arith.constant 0 : i32
    return %arg0, %c0_i32 : i32, i32
  }
}

</mosaic_0001>

<bundles_post_ra>
// kernel: tpu_custom_call.1
= control target key start
LH: loop header
LB: loop body
LE: loop exit
PB: predicated region body
PF: predicated region fallthrough
CT: control target
= control target key end

     0   :  { %12 = vsyncpa [#allocation3], 0  ;;  %s815_s0 = inlined_call_operand.hbm [shape: bf16[16,128], index: 0, kind: input, shape index: {}]   ;;  %s816_s1 = inlined_call_operand.vmem [shape: f32[1,128], index: 1, kind: input, shape index: {}]   ;;  %s817_s2 = inlined_call_operand.vmem [shape: f32[1,128], index: 2, kind: input, shape index: {}]   ;;  %s818_s3 = inlined_call_operand.hbm [shape: bf16[128,256], index: 3, kind: input, shape index: {}]   ;;  %s819_s4 = inlined_call_operand.vmem [shape: f32[1,256], index: 4, kind: input, shape index: {}]   ;;  %s820_s5 = inlined_call_operand.hbm [shape: bf16[256,128], index: 5, kind: input, shape index: {}]   ;;  %s821_s6 = inlined_call_operand.vmem [shape: f32[1,128], index: 6, kind: input, shape index: {}]   ;;  %s822_s7 = inlined_call_operand.hbm [shape: f32[16,128], index: 7, kind: output, shape index: {}]  }
   0x1   :  { %13 = vsyncpa [#allocation6], 0 }
   0x2   :  { %14 = vsyncpa [#allocation4], 0  ;;  %s700_s24 = smov [#allocation5]   ;;  %s606_s28 = scalar_lea.hbm %s818_s3, 2048 }
   0x3   :  { %s36_s25 = sshll.u32 %s700_s24, 4  ;;  %p607_p0 = scmp.ne.s32.totalorder %s818_s3, %s606_s28  ;;  %s37_s25 = int_to_ptr.vmem [resolvable:$true] %s36_s25 }
   0x4   :  { %p610_p1 = scmp.lt.u32.totalorder %s606_s28, %s818_s3 }
   0x6   :  { %p612_p2 = pnand %p610_p1, %p607_p0 }
   0x8   :  { %615 = shalt.err (!%p612_p2)
}
   0x9   :  { %s616_s10 = scalar_lea.vmem %s37_s25, 2048  ;;  %p621_p4 = scmp.lt.s32.totalorder %s37_s25, %s37_s25 }
   0xa   :  { %p617_p3 = scmp.ne.s32.totalorder %s37_s25, %s616_s10  ;;  %p622_p5 = scmp.lt.s32.totalorder %s616_s10, %s616_s10 }
   0xc   :  { %p623_p6 = por %p622_p5, %p621_p4 }
   0xe   :  { %p624_p7 = pnand %p623_p6, %p617_p3 }
  0x10   :  { %627 = shalt.err (!%p624_p7)
}
  0x11   :  { %s701_s11 = smov 128   ;;  %s702_s12 = smov 8  }
  0x12   :  { %42 = dma.hbm_to_vmem [thread:$0]  %s818_s3, 2048, %s37_s25, [#allocation6], %s701_s11, %s701_s11, %s702_s12  }
  0x13   :  { %s703_s15 = smov [#allocation2]   ;;  %s628_s19 = scalar_lea.hbm %s815_s0, 128 }
  0x14   :  { %s20_s16 = sshll.u32 %s703_s15, 4  ;;  %p629_p8 = scmp.ne.s32.totalorder %s815_s0, %s628_s19  ;;  %s21_s16 = int_to_ptr.vmem [resolvable:$true] %s20_s16 }
  0x15   :  { %p632_p9 = scmp.lt.u32.totalorder %s628_s19, %s815_s0 }
  0x17   :  { %p634_p10 = pnand %p632_p9, %p629_p8 }
  0x19   :  { %637 = shalt.err (!%p634_p10)
}
  0x1a   :  { %s638_s24 = scalar_lea.vmem %s21_s16, 128  ;;  %p643_p12 = scmp.lt.s32.totalorder %s21_s16, %s21_s16 }
  0x1b   :  { %p639_p11 = scmp.ne.s32.totalorder %s21_s16, %s638_s24  ;;  %p644_p13 = scmp.lt.s32.totalorder %s638_s24, %s638_s24 }
  0x1d   :  { %p645_p0 = por %p644_p13, %p643_p12 }
  0x1f   :  { %p646_p1 = pnand %p645_p0, %p639_p11 }
  0x21   :  { %649 = shalt.err (!%p646_p1)
}
  0x22   :  { %s704_s3 = smov 64   ;;  %s705_s25 = smov 4  }
  0x23   :  { %26 = dma.hbm_to_vmem [thread:$0]  %s815_s0, 128, %s21_s16, [#allocation3], %s704_s3, %s704_s3, %s705_s25  }
  0x24   :  { %s706_s28 = smov [#allocation7]   ;;  %s650_s9 = scalar_lea.hbm %s820_s5, 2048 }
  0x25   :  { %s50_s29 = sshll.u32 %s706_s28, 4  ;;  %p651_p2 = scmp.ne.s32.totalorder %s820_s5, %s650_s9  ;;  %s51_s29 = int_to_ptr.vmem [resolvable:$true] %s50_s29 }
  0x26   :  { %p654_p3 = scmp.lt.u32.totalorder %s650_s9, %s820_s5 }
  0x28   :  { %p656_p4 = pnand %p654_p3, %p651_p2 }
  0x2a   :  { %659 = shalt.err (!%p656_p4)
}
  0x2b   :  { %s660_s17 = scalar_lea.vmem %s51_s29, 2048  ;;  %p665_p6 = scmp.lt.s32.totalorder %s51_s29, %s51_s29 }
  0x2c   :  { %p661_p5 = scmp.ne.s32.totalorder %s51_s29, %s660_s17  ;;  %p666_p7 = scmp.lt.s32.totalorder %s660_s17, %s660_s17 }
  0x2e   :  { %p667_p8 = por %p666_p7, %p665_p6 }
  0x30   :  { %p668_p9 = pnand %p667_p8, %p661_p5 }
  0x32   :  { %671 = shalt.err (!%p668_p9)
}
  0x33   :  { %56 = dma.hbm_to_vmem [thread:$0]  %s820_s5, 2048, %s51_s29, [#allocation6], %s704_s3, %s704_s3, %s705_s25  }
  0x34   :  { %694 = dma.done.wait [#allocation3], 128  }
  0x35   :  { %695 = vsyncadd [#allocation3], 4294967168 }
  0x36   :  { %696 = dma.done.wait [#allocation6], 4096  }
  0x37   :  { %697 = vsyncadd [#allocation6], 4294963200  ;;  %v520_v0 = vld [vmem:[#allocation2] sm:$0xff]   ;;  %v554_v3 = vld [vmem:[#allocation5 + $0x4] ss:$8 sps:$4 sm:$0xff]   ;;  %v707_v22 = vmov 0   ;;  %v133_v61 = vlaneseq }
  0x38   :  { %v521_v1 = vunpack.c.l.bf16 %v520_v0  ;;  %v522_v2 = vunpack.c.h.bf16 %v520_v0  ;;  %v556_v4 = vld [vmem:[#allocation5] ss:$8 sps:$4 sm:$0xff]   ;;  %v557_v5 = vld [vmem:[#allocation5 + $0x14] ss:$8 sps:$4 sm:$0xff]   ;;  %223 = vmatprep.subr.bf16.mxu0 %v554_v3  ;;  %v559_v14 = vld [vmem:[#allocation5 + $0x10] ss:$8 sps:$4 sm:$0xff]   ;;  %255 = vmatprep.mubr.bf16.mxu0 %v707_v22 }
  0x39   :  { %224 = vmatpush1.bf16.msra.mxu0 %v556_v4  ;;  %v560_v15 = vld [vmem:[#allocation5 + $0x24] ss:$8 sps:$4 sm:$0xff]   ;;  %v562_v16 = vld [vmem:[#allocation5 + $0x20] ss:$8 sps:$4 sm:$0xff]   ;;  %v563_v17 = vld [vmem:[#allocation5 + $0x34] ss:$8 sps:$4 sm:$0xff]  }
  0x3a   :  { %73 = vadd.xlane.f32.xlu0 %v521_v1  ;;  %225 = vmatprep.subr.bf16.mxu0 %v557_v5  ;;  %v565_v18 = vld [vmem:[#allocation5 + $0x30] ss:$8 sps:$4 sm:$0xff]   ;;  %v566_v19 = vld [vmem:[#allocation5 + $0x44] ss:$8 sps:$4 sm:$0xff]   ;;  %v568_v20 = vld [vmem:[#allocation5 + $0x40] ss:$8 sps:$4 sm:$0xff]  }
  0x3b   :  { %v569_v21 = vld [vmem:[#allocation5 + $0x54] ss:$8 sps:$4 sm:$0xff]   ;;  %v571_v23 = vld [vmem:[#allocation5 + $0x50] ss:$8 sps:$4 sm:$0xff]   ;;  %v572_v24 = vld [vmem:[#allocation5 + $0x64] ss:$8 sps:$4 sm:$0xff]  }
  0x3c   :  { %v574_v25 = vld [vmem:[#allocation5 + $0x60] ss:$8 sps:$4 sm:$0xff]   ;;  %v575_v26 = vld [vmem:[#allocation5 + $0x74] ss:$8 sps:$4 sm:$0xff]   ;;  %v577_v27 = vld [vmem:[#allocation5 + $0x70] ss:$8 sps:$4 sm:$0xff]  }
  0x3d   :  { %226 = vmatpush1.bf16.msra.mxu0 %v559_v14  ;;  %v578_v28 = vld [vmem:[#allocation7 + $0x40] sm:$0xff]   ;;  %v580_v30 = vld [vmem:[#allocation7 + $0x48] sm:$0xff]   ;;  %v484_v40 = vld [vmem:[%s816_s1] ss:$0 sm:$0xff]  ;;  %v134_v62 = vshrl.u32 %v133_v61, 7  ;;  %s708_s22 = smov [#allocation8]  }
  0x3e   :  { %75 = vadd.xlane.f32.xlu0 %v522_v2  ;;  %227 = vmatprep.subr.bf16.mxu0 %v560_v15  ;;  %v579_v29 = vld [vmem:[#allocation7] sm:$0xff]   ;;  %v581_v31 = vld [vmem:[#allocation7 + $0x8] sm:$0xff]   ;;  %v485_v44 = vld [vmem:[%s817_s2] ss:$0 sm:$0xff]  ;;  %s471_s23 = sshll.u32 %s708_s22, 4  ;;  %s472_s23 = int_to_ptr.vmem [resolvable:$true] %s471_s23 }
  0x3f   :  { %523 = vmatprep.subr.bf16.mxu1 %v578_v28  ;;  %v582_v49 = vld [vmem:[#allocation7 + $0x50] sm:$0xff]   ;;  %v584_v51 = vld [vmem:[#allocation7 + $0x58] sm:$0xff]   ;;  %v586_v53 = vld [vmem:[#allocation7 + $0x60] sm:$0xff]   ;;  %v135_v63 = vsub.s32 0, %v134_v62  ;;  %s672_s24 = scalar_lea.vmem %s472_s23, 256  ;;  %p677_p11 = scmp.lt.s32.totalorder %s472_s23, %s472_s23 }
  0x40   :  { %524 = vmatpush3.bf16.msra.mxu1 %v579_v29  ;;  %v583_v50 = vld [vmem:[#allocation7 + $0x10] sm:$0xff]   ;;  %v585_v52 = vld [vmem:[#allocation7 + $0x18] sm:$0xff]   ;;  %v587_v54 = vld [vmem:[#allocation7 + $0x20] sm:$0xff]   ;;  %p673_p10 = scmp.ne.s32.totalorder %s472_s23, %s672_s24  ;;  %p678_p12 = scmp.lt.s32.totalorder %s672_s24, %s672_s24 }
  0x41   :  { %228 = vmatpush1.bf16.msra.mxu0 %v562_v16  ;;  %525 = vmatprep.subr.bf16.mxu1 %v580_v30  ;;  %v588_v55 = vld [vmem:[#allocation7 + $0x68] sm:$0xff]   ;;  %v590_v57 = vld [vmem:[#allocation7 + $0x70] sm:$0xff]   ;;  %v592_v59 = vld [vmem:[#allocation7 + $0x78] sm:$0xff]  }
  0x42   :  { %229 = vmatprep.subr.bf16.mxu0 %v563_v17  ;;  %v589_v56 = vld [vmem:[#allocation7 + $0x28] sm:$0xff]   ;;  %v591_v58 = vld [vmem:[#allocation7 + $0x30] sm:$0xff]   ;;  %v593_v60 = vld [vmem:[#allocation7 + $0x38] sm:$0xff]   ;;  %p679_p13 = por %p678_p12, %p677_p11 }
  0x43   :  { %v131_v0 = vld [vmem:[%s819_s4] sm:$0x3] }
  0x44   :  { %526 = vmatpush3.bf16.msra.mxu1 %v581_v31  ;;  %p680_p0 = pnand %p679_p13, %p673_p10 }
  0x45   :  { %230 = vmatpush1.bf16.msra.mxu0 %v565_v18  ;;  %527 = vmatprep.subr.bf16.mxu1 %v582_v49 }
  0x46   :  { %231 = vmatprep.subr.bf16.mxu0 %v566_v19 }
  0x48   :  { %528 = vmatpush3.bf16.msra.mxu1 %v583_v50 }
  0x49   :  { %232 = vmatpush1.bf16.msra.mxu0 %v568_v20  ;;  %529 = vmatprep.subr.bf16.mxu1 %v584_v51 }
  0x4a   :  { %233 = vmatprep.subr.bf16.mxu0 %v569_v21 }
  0x4c   :  { %530 = vmatpush3.bf16.msra.mxu1 %v585_v52 }
  0x4d   :  { %234 = vmatpush1.bf16.msra.mxu0 %v571_v23  ;;  %531 = vmatprep.subr.bf16.mxu1 %v586_v53 }
  0x4e   :  { %235 = vmatprep.subr.bf16.mxu0 %v572_v24 }
  0x50   :  { %532 = vmatpush3.bf16.msra.mxu1 %v587_v54 }
  0x51   :  { %236 = vmatpush1.bf16.msra.mxu0 %v574_v25  ;;  %533 = vmatprep.subr.bf16.mxu1 %v588_v55 }
  0x52   :  { %237 = vmatprep.subr.bf16.mxu0 %v575_v26 }
  0x54   :  { %534 = vmatpush3.bf16.msra.mxu1 %v589_v56 }
  0x55   :  { %238 = vmatpush1.bf16.msra.mxu0 %v577_v27  ;;  %535 = vmatprep.subr.bf16.mxu1 %v590_v57 }
  0x58   :  { %536 = vmatpush3.bf16.msra.mxu1 %v591_v58 }
  0x59   :  { %537 = vmatprep.subr.bf16.mxu1 %v592_v59 }
  0x5c   :  { %538 = vmatpush3.bf16.msra.mxu1 %v593_v60 }
  0xc7   :  { %v74_v6 = vpop.xlane.xlu0 %73 }
  0xc8   :  { %v78_v7 = vmul.f32 0.0078125, %v74_v6 }
  0xca   :  { %v80_v8 = vsub.f32 %v521_v1, %v78_v7  ;;  %v139_v1 = vsub.s32 1, %v134_v62 }
  0xcb   :  { %v76_v9 = vpop.xlane.xlu0 %75 }
  0xcc   :  { %v79_v10 = vmul.f32 0.0078125, %v76_v9  ;;  %v82_v11 = vmul.f32 %v80_v8, %v80_v8  ;;  %v140_v3 = vrot.slane %v131_v0, %v139_v1 }
  0xce   :  { %v81_v12 = vsub.f32 %v522_v2, %v79_v10  ;;  %84 = vadd.xlane.f32.xlu1 %v82_v11  ;;  %v136_v2 = vrot.slane %v131_v0, %v135_v63 }
  0xd0   :  { %v83_v13 = vmul.f32 %v81_v12, %v81_v12 }
  0xd2   :  { %86 = vadd.xlane.f32.xlu1 %v83_v13 }
 0x15b   :  { %v85_v32 = vpop.xlane.xlu1 %84 }
 0x15c   :  { %v88_v33 = vmul.f32 0.0078125, %v85_v32 }
 0x15e   :  { %v90_v34 = vadd.f32 1e-05, %v88_v33 }
 0x15f   :  { %v87_v35 = vpop.xlane.xlu1 %86 }
 0x160   :  { %594 = vrsqrt.f32 %v90_v34  ;;  %v89_v36 = vmul.f32 0.0078125, %v87_v35  ;;  %v502_v35 = vld [vmem:[%s821_s6] ss:$0 sm:$0xff] }
 0x162   :  { %v91_v37 = vadd.f32 1e-05, %v89_v36 }
 0x164   :  { %596 = vrsqrt.f32 %v91_v37 }
 0x16a   :  { %v595_v38 = vpop.eup %594 }
 0x16b   :  { %v94_v39 = vmul.f32 %v595_v38, %v80_v8 }
 0x16d   :  { %v103_v43 = vmul.f32 %v484_v40, %v94_v39 }
 0x16e   :  { %v597_v41 = vpop.eup %596 }
 0x16f   :  { %v95_v42 = vmul.f32 %v597_v41, %v81_v12  ;;  %v112_v46 = vadd.f32 %v485_v44, %v103_v43 }
 0x171   :  { %v104_v45 = vmul.f32 %v484_v40, %v95_v42 }
 0x173   :  { %v113_v47 = vadd.f32 %v485_v44, %v104_v45 }
 0x175   :  { %v114_v48 = vpack.c.bf16 %v113_v47, %v112_v46 }
 0x177   :  { %256 = vmatmul.mubr.bf16.vlgmr.msra.gmra.mrb[0].mxu0 %v114_v48 }
 0x24a   :  { %v257_v4 = vpop.f32.mrb[0].mxu0 }
 0x24b   :  { %v258_v5 = vadd.f32 %v257_v4, %v136_v2  ;;  %v259_v6 = vpop.f32.mrb[1].mxu0 }
 0x24c   :  { %v260_v7 = vadd.f32 %v259_v6, %v140_v3  ;;  %v261_v8 = vpop.f32.mrb[2].mxu0 }
 0x24d   :  { %v270_v9 = vmul.f32 0.70710677, %v258_v5  ;;  %v262_v10 = vadd.f32 %v261_v8, %v136_v2  ;;  %v263_v11 = vpop.f32.mrb[3].mxu0  ;;  %v266_v22 = vmul.f32 0.5, %v258_v5 }
 0x24e   :  { %v271_v12 = vmul.f32 0.70710677, %v260_v7  ;;  %v264_v13 = vadd.f32 %v263_v11, %v140_v3  ;;  %v267_v25 = vmul.f32 0.5, %v260_v7 }
 0x24f   :  { %598 = verf.f32 %v270_v9  ;;  %v272_v14 = vmul.f32 0.70710677, %v262_v10  ;;  %v268_v23 = vmul.f32 0.5, %v262_v10 }
 0x250   :  { %600 = verf.f32 %v271_v12  ;;  %v273_v15 = vmul.f32 0.70710677, %v264_v13  ;;  %v269_v26 = vmul.f32 0.5, %v264_v13 }
 0x251   :  { %602 = verf.f32 %v272_v14 }
 0x252   :  { %604 = verf.f32 %v273_v15 }
 0x259   :  { %v599_v16 = vpop.eup %598 }
 0x25a   :  { %v601_v17 = vpop.eup %600  ;;  %v278_v18 = vadd.f32 1.0, %v599_v16 }
 0x25b   :  { %v603_v19 = vpop.eup %602  ;;  %v279_v20 = vadd.f32 1.0, %v601_v17 }
 0x25c   :  { %v605_v21 = vpop.eup %604  ;;  %v280_v24 = vadd.f32 1.0, %v603_v19  ;;  %v282_v28 = vmul.f32 %v278_v18, %v266_v22 }
 0x25d   :  { %v281_v27 = vadd.f32 1.0, %v605_v21  ;;  %v283_v30 = vmul.f32 %v279_v20, %v267_v25 }
 0x25e   :  { %v284_v29 = vmul.f32 %v280_v24, %v268_v23 }
 0x25f   :  { %v285_v31 = vmul.f32 %v281_v27, %v269_v26 }
 0x260   :  { %v286_v32 = vpack.c.bf16 %v284_v29, %v282_v28 }
 0x261   :  { %v287_v33 = vpack.c.bf16 %v285_v31, %v283_v30 }
 0x263   :  { %455 = vmatprep.mubr.bf16.mxu1 %v287_v33 }
 0x264   :  { %456 = vmatmul.mubr.bf16.vlgmr.msra.gmra.mrb[0].mxu1 %v286_v32 }
 0x337   :  { %v539_v34 = vpop.f32.mrb[0].mxu1 }
 0x338   :  { %v540_v36 = vpop.f32.mrb[1].mxu1 }
 0x339   :  { %v541_v37 = vadd.f32 %v540_v36, %v539_v34  ;;  %v542_v38 = vpop.f32.mrb[2].mxu1 }
 0x33a   :  { %v543_v39 = vpop.f32.mrb[3].mxu1 }
 0x33b   :  { %v458_v40 = vadd.f32 %v541_v37, %v502_v35  ;;  %v544_v41 = vadd.f32 %v543_v39, %v542_v38 }
 0x33d   :  { %464 = vst [vmem:[#allocation8] sm:$0xff] %v458_v40  ;;  %v461_v42 = vadd.f32 %v544_v41, %v502_v35 }
 0x33f   :  { %465 = vst [vmem:[#allocation8 + $0x8] sm:$0xff] %v461_v42 }
 0x340   :  { %683 = shalt.err (!%p680_p0)
}
 0x341   :  { %s684_s25 = scalar_lea.hbm %s822_s7, 256 }
 0x342   :  { %p685_p1 = scmp.ne.s32.totalorder %s822_s7, %s684_s25  ;;  %p688_p2 = scmp.lt.u32.totalorder %s684_s25, %s822_s7 }
 0x344   :  { %p690_p3 = pnand %p688_p2, %p685_p1 }
 0x346   :  { %693 = shalt.err (!%p690_p3)
}
 0x347   :  { %477 = dma.vmem_to_hbm [thread:$0]  %s472_s23, 256, %s822_s7, [#allocation4], %s701_s11, %s701_s11, %s702_s12  }
 0x348   :  { %698 = dma.done.wait [#allocation4], 256  }
 0x349   :  { %699 = vsyncadd [#allocation4], 4294967040 }
 0x34a   :  { %481 = vsyncpa [#allocation3], 1 }
 0x34b   :  { %482 = vsyncpa [#allocation6], 1 }
 0x34c   :  { %483 = vsyncpa [#allocation4], 1 }

</bundles_post_ra>
